<compile_context>
chip_gen: v7x
topology: tpu7x:2x2x1
jax: 0.10.0
libtpu: 0.0.40
codegen_flags: <defaults>
</compile_context>

<pallas_src>
import jax
import jax.numpy as jnp
from jax.experimental import pallas as pl
from jax.experimental.pallas import tpu as pltpu


# ---------------------------------------------------------------------------
# Materializing identity: one HBM -> HBM DMA, no grid, no VMEM staging.
# ---------------------------------------------------------------------------
def _dma_copy_kernel(x_hbm, o_hbm, sem):
    copy = pltpu.make_async_copy(x_hbm, o_hbm, sem)
    copy.start()
    copy.wait()


def _materializing_copy(x: jax.Array) -> jax.Array:
    n_bytes = x.size * jnp.dtype(x.dtype).itemsize
    return pl.pallas_call(
        _dma_copy_kernel,
        out_shape=jax.ShapeDtypeStruct(x.shape, x.dtype),
        in_specs=[pl.BlockSpec(memory_space=pl.ANY)],   # raw HBM ref, no auto-DMA
        out_specs=pl.BlockSpec(memory_space=pl.ANY),    # raw HBM ref, no auto-DMA
        scratch_shapes=[pltpu.SemaphoreType.DMA],
        cost_estimate=pl.CostEstimate(
            flops=0, transcendentals=0, bytes_accessed=2 * n_bytes
        ),
    )(x)


def identity_map(x: jax.Array, *args, materialize: bool = False, **kwargs) -> jax.Array:
    """Pallas identity projector (mirrors IdentityMap.forward).

    materialize=False (default): returns x unchanged -- zero launches, zero HBM
    traffic, exactly the PyTorch `return x` semantics.
    materialize=True: returns a fresh (non-aliased) buffer produced by a single
    HBM->HBM DMA inside a Pallas kernel.
    """
    del args, kwargs  # forward(x, *args, **kwargs) ignores extras
    if not materialize:
        return x
    if x.size == 0:
        return x  # degenerate shape: nothing to copy
    return _materializing_copy(x)


def identity_map_config():
    # Mirrors the PyTorch @property `config`.
    return {"mm_projector_type": "identity"}


if __name__ == "__main__":
    key = jax.random.PRNGKey(0)
    # Small projector-style input: [batch, seq, hidden]
    batch, seq, hidden = 2, 8, 32
    x = jax.random.normal(key, (batch, seq, hidden), dtype=jnp.float32)

    # Primary path: literal identity (no kernel launch, no HBM traffic).
    y = identity_map(x)
    jax.block_until_ready(y)
    assert y.shape == x.shape and y.dtype == x.dtype
    assert bool(jnp.all(y == x))

    # Materializing path: single HBM->HBM DMA into a fresh buffer.
    y2 = identity_map(x, materialize=True)
    jax.block_until_ready(y2)
    assert y2.shape == x.shape and y2.dtype == x.dtype
    assert bool(jnp.all(y2 == x))

    # Odd / ragged shape: DMA path has no lane-density or (8,128) constraints.
    x_odd = jax.random.normal(jax.random.PRNGKey(1), (3, 5, 7), dtype=jnp.float32)
    y3 = identity_map(x_odd, materialize=True)
    jax.block_until_ready(y3)
    assert y3.shape == x_odd.shape and y3.dtype == x_odd.dtype
    assert bool(jnp.all(y3 == x_odd))

    # bf16 input: dtype-agnostic (no sublane-packing concerns on the DMA path).
    x_bf16 = x.astype(jnp.bfloat16)
    y4 = identity_map(x_bf16, materialize=True)
    jax.block_until_ready(y4)
    assert y4.dtype == jnp.bfloat16 and bool(jnp.all(y4 == x_bf16))

    assert identity_map_config() == {"mm_projector_type": "identity"}
    print("KERNEL_OK")
</pallas_src>

<mosaic_0001>
module attributes {stable_mosaic.version = 11 : i64} {
  func.func @_dma_copy_kernel(%arg0: memref<2x8x32xf32, #tpu.memory_space<any>>, %arg1: memref<2x8x32xf32, #tpu.memory_space<any>>, %arg2: memref<!tpu.dma_semaphore, #tpu.memory_space<semaphore_mem>>) attributes {dimension_semantics = [], scalar_prefetch = 0 : i64, scratch_operands = 1 : i64, tpu.core_type = #tpu.core_type<tc>} {
    tpu.enqueue_dma source(%arg0 : memref<2x8x32xf32, #tpu.memory_space<any>>) target(%arg1 : memref<2x8x32xf32, #tpu.memory_space<any>>) target_semaphore(%arg2 : memref<!tpu.dma_semaphore, #tpu.memory_space<semaphore_mem>>)
    tpu.wait_dma2 semaphore(%arg2 : memref<!tpu.dma_semaphore, #tpu.memory_space<semaphore_mem>>) src(%arg0 : memref<2x8x32xf32, #tpu.memory_space<any>>) dst(%arg1 : memref<2x8x32xf32, #tpu.memory_space<any>>)
    return
  }
}

</mosaic_0001>

<bundles_post_ra>
// kernel: tpu_custom_call.1
= control target key start
LH: loop header
LB: loop body
LE: loop exit
PB: predicated region body
PF: predicated region fallthrough
CT: control target
= control target key end

     0   :  { %s35_s6 = smov [#allocation2]   ;;  %s36_s7 = smov [#allocation3]   ;;  %s54_s0 = inlined_call_operand.hbm [shape: f32[2,8,32], index: 0, kind: input, shape index: {}]   ;;  %s55_s1 = inlined_call_operand.hbm [shape: f32[2,8,32], index: 1, kind: output, shape index: {}]  }
   0x1   :  { %s37_s8 = smov 0  }
   0x2   :  { %18 = dma.general %s54_s0, 256, %s55_s1, %s35_s6, %s36_s7, [#allocation4], %s37_s8, 0  }
   0x3   :  { %33 = dma.done.wait [#allocation2], 256 }
   0x4   :  { %34 = vsyncadd [#allocation2], 4294967040 }
   0x5   :  { %23 = vsyncmov [#allocation2] }
   0x8   :  { %s24_s13 = vpop.sfrf %23 }
   0x9   :  { %p29_p0 = scmp.ne.s32.totalorder %s24_s13, 0 }
   0xb   :  { %28 = shalt.err (%p29_p0)  }

</bundles_post_ra>
